<compile_context>
chip_gen: v6e
topology: v6e:2x2x1
jax: 0.10.0
libtpu: 0.0.40
codegen_flags: <defaults>
</compile_context>

<pallas_src>
import functools

import jax
import jax.numpy as jnp
from jax.experimental import pallas as pl
from jax.experimental.pallas import tpu as pltpu

SIZE = 372

_SELU_ALPHA = 1.6732632423543772
_SELU_SCALE = 1.0507009873554805

_H1 = SIZE          # 372
_H2 = 2 * SIZE      # 744 (true output width; last lane group masked on store)
_H1P = 384          # 372 padded to a multiple of 128 (lane axis of the intermediate)


def _round_up(v, m):
    return ((v + m - 1) // m) * m


@functools.lru_cache(maxsize=1)
def _chip_config():
    """Returns (max_batch_tile_rows, scoped_vmem_limit_bytes) per TPU generation."""
    try:
        vmem_phys = getattr(pltpu.get_tpu_info(), "vmem_capacity_bytes", 64 << 20)
    except Exception:
        vmem_phys = 64 << 20
    if vmem_phys >= (128 << 20):        # v5e / v6e: 128 MiB physical VMEM
        return 4096, 64 << 20
    return 2048, 48 << 20               # v7x: 64 MiB physical per TensorCore


def _pick_tile(batch, obs_p, tb_max, vmem_limit):
    """Balanced batch tile (multiple of 8) that fits a crude per-row VMEM budget."""
    obs_l = max(_round_up(obs_p, 128), 128)   # lane footprint of the x tile in VMEM
    h2_l = _round_up(_H2, 128)                # 768: lane footprint of out tile / y
    per_row = (
        2 * h2_l * 2          # double-buffered bf16 out tile
        + 2 * obs_l * 4       # double-buffered f32 x tile
        + obs_l * 2           # x bf16 cast
        + _H1P * 4 * 2        # h f32 + SELU temp
        + _H1P * 2            # h bf16 cast
        + h2_l * 4            # y f32 accumulator
    )
    budget = int(vmem_limit * 0.75) - (2 << 20)   # headroom for weights/compiler scratch
    tb_cap = max(256, (budget // per_row) // 8 * 8)
    tb_max = min(tb_max, tb_cap)
    n_tiles = pl.cdiv(batch, tb_max)
    tb = _round_up(pl.cdiv(batch, n_tiles), 8)
    return tb, n_tiles * tb


def _randomnet_kernel(x_ref, w1_ref, b1_ref, w2_ref, b2_ref, o_ref):
    # Two MXU matmuls (bf16 inputs, f32 accumulation) with a fused f32 SELU in between.
    x = x_ref[...].astype(jnp.bfloat16)                                        # (TB, obs_p)
    h = jnp.dot(x, w1_ref[...], preferred_element_type=jnp.float32) + b1_ref[...]  # (TB, H1P)
    # SELU: scale * (x if x > 0 else alpha * (exp(x) - 1)) -- kept in f32 (EUP/VPU path).
    h = _SELU_SCALE * jnp.where(h > 0, h, _SELU_ALPHA * (jnp.exp(h) - 1.0))
    y = jnp.dot(h.astype(jnp.bfloat16), w2_ref[...],
                preferred_element_type=jnp.float32) + b2_ref[...]              # (TB, 744) f32
    o_ref[...] = y.astype(o_ref.dtype)                                         # bf16 store


def prepare_params(w1, b1, w2, b2):
    """PyTorch nn.Linear layout in -> padded, transposed, bf16 kernel layout out.

    w1: (SIZE, obs), b1: (SIZE,), w2: (2*SIZE, SIZE), b2: (2*SIZE,).
    Call once and reuse; keeps per-step transpose/pad/cast work out of the hot path.
    """
    w1 = jnp.asarray(w1, jnp.float32)
    w2 = jnp.asarray(w2, jnp.float32)
    b1 = jnp.asarray(b1, jnp.float32)
    b2 = jnp.asarray(b2, jnp.float32)
    obs = w1.shape[1]
    # Pad obs to a lane multiple only when it is large enough to matter.
    obs_p = obs if obs <= 128 else _round_up(obs, 128)

    w1_t = jnp.zeros((obs_p, _H1P), jnp.bfloat16).at[:obs, :_H1].set(
        w1.T.astype(jnp.bfloat16))                                    # (obs_p, 384) bf16
    w2_t = jnp.zeros((_H1P, _H2), jnp.bfloat16).at[:_H1, :].set(
        w2.T.astype(jnp.bfloat16))                                    # (384, 744) bf16
    b1_p = jnp.zeros((1, _H1P), jnp.float32).at[0, :_H1].set(b1)      # (1, 384) f32
    b2_p = b2.reshape(1, _H2)                                         # (1, 744) f32
    return (w1_t, b1_p, w2_t, b2_p)


@functools.partial(jax.jit, static_argnames=("out_dtype",))
def randomnet_forward(x, params, out_dtype=jnp.bfloat16):
    """x: (B, obs_space) f32. params: output of prepare_params(). Returns (B, 2*SIZE)."""
    w1_t, b1_p, w2_t, b2_p = params
    x = jnp.asarray(x, jnp.float32)
    B, obs = x.shape
    obs_p = w1_t.shape[0]

    tb_max, vmem_limit = _chip_config()
    tb, bp = _pick_tile(B, obs_p, tb_max, vmem_limit)
    pad_rows, pad_cols = bp - B, obs_p - obs
    if pad_rows or pad_cols:
        x = jnp.pad(x, ((0, pad_rows), (0, pad_cols)))
    grid = (bp // tb,)

    cost = pl.CostEstimate(
        flops=2 * bp * (obs_p * _H1P + _H1P * _H2),
        transcendentals=bp * _H1P,
        bytes_accessed=(x.size * 4 + w1_t.size * 2 + w2_t.size * 2
                        + b1_p.size * 4 + b2_p.size * 4
                        + bp * _H2 * jnp.dtype(out_dtype).itemsize),
    )

    out = pl.pallas_call(
        _randomnet_kernel,
        out_shape=jax.ShapeDtypeStruct((bp, _H2), out_dtype),
        grid=grid,
        in_specs=[
            pl.BlockSpec((tb, obs_p), lambda i: (i, 0)),        # x: tiled over batch
            pl.BlockSpec((obs_p, _H1P), lambda i: (0, 0)),      # weights/biases: VMEM-resident
            pl.BlockSpec((1, _H1P), lambda i: (0, 0)),
            pl.BlockSpec((_H1P, _H2), lambda i: (0, 0)),
            pl.BlockSpec((1, _H2), lambda i: (0, 0)),
        ],
        out_specs=pl.BlockSpec((tb, _H2), lambda i: (i, 0)),
        compiler_params=pltpu.CompilerParams(
            dimension_semantics=("parallel",),
            vmem_limit_bytes=vmem_limit,
        ),
        cost_estimate=cost,
    )(x, w1_t, b1_p, w2_t, b2_p)

    # Only strip batch padding (at most a few rows thanks to balanced tiling);
    # the output width is already exactly 2*SIZE, so no column slice / extra copy.
    if pad_rows:
        out = out[:B]
    # The PyTorch `.reshape(out.shape[0], -1)` is a no-op here.
    return out


def _reference(x, w1, b1, w2, b2):
    x = jnp.asarray(x, jnp.float32)
    h = x @ jnp.asarray(w1, jnp.float32).T + jnp.asarray(b1, jnp.float32)
    h = _SELU_SCALE * jnp.where(h > 0, h, _SELU_ALPHA * (jnp.exp(h) - 1.0))
    return (h @ jnp.asarray(w2, jnp.float32).T + jnp.asarray(b2, jnp.float32)).reshape(
        x.shape[0], -1)


if __name__ == "__main__":
    key = jax.random.PRNGKey(0)
    k_x, k_w1, k_b1, k_w2, k_b2 = jax.random.split(key, 5)

    batch = 2
    obs_space = 32  # small obs dim consistent with Linear(obs_space, SIZE)

    x = jax.random.normal(k_x, (batch, obs_space), dtype=jnp.float32)

    # Deterministic PyTorch-style uniform(-1/sqrt(fan_in), 1/sqrt(fan_in)) init.
    lim1 = 1.0 / jnp.sqrt(obs_space)
    w1 = jax.random.uniform(k_w1, (SIZE, obs_space), jnp.float32, -lim1, lim1)
    b1 = jax.random.uniform(k_b1, (SIZE,), jnp.float32, -lim1, lim1)
    lim2 = 1.0 / jnp.sqrt(SIZE)
    w2 = jax.random.uniform(k_w2, (2 * SIZE, SIZE), jnp.float32, -lim2, lim2)
    b2 = jax.random.uniform(k_b2, (2 * SIZE,), jnp.float32, -lim2, lim2)

    params = prepare_params(w1, b1, w2, b2)
    out = randomnet_forward(x, params)
    out = jax.block_until_ready(out)

    ref = _reference(x, w1, b1, w2, b2)
    assert out.shape == (batch, 2 * SIZE), out.shape
    # bf16 MXU inputs + bf16 output with f32 accumulation -> loosened tolerance vs the
    # pure-f32 reference (deliberate; acceptable for an RND target network as long as the
    # predictor network uses the same precision path).
    err = jnp.max(jnp.abs(out.astype(jnp.float32) - ref))
    assert jnp.allclose(out.astype(jnp.float32), ref, atol=5e-2, rtol=5e-2), (
        "mismatch vs JAX reference, max abs err = %f" % float(err))

    print("KERNEL_OK")
</pallas_src>

<mosaic_0001>
module attributes {stable_mosaic.version = 11 : i64} {
  func.func @_randomnet_kernel(%arg0: i32, %arg1: memref<8x32xf32, #tpu.memory_space<vmem>>, %arg2: memref<32x384xbf16, #tpu.memory_space<vmem>>, %arg3: memref<1x384xf32, #tpu.memory_space<vmem>>, %arg4: memref<384x744xbf16, #tpu.memory_space<vmem>>, %arg5: memref<1x744xf32, #tpu.memory_space<vmem>>, %arg6: memref<8x744xbf16, #tpu.memory_space<vmem>>) attributes {dimension_semantics = [#tpu.dimension_semantics<parallel>], iteration_bounds = array<i64: 1>, scalar_prefetch = 0 : i64, scratch_operands = 0 : i64, tpu.core_type = #tpu.core_type<tc>, window_params = [{transform_indices = @transform_0, window_bounds = array<i64: 8, 32>}, {pipeline_mode = #tpu.pipeline_mode<synchronous>, transform_indices = @transform_1, window_bounds = array<i64: 32, 384>}, {pipeline_mode = #tpu.pipeline_mode<synchronous>, transform_indices = @transform_2, window_bounds = array<i64: 1, 384>}, {pipeline_mode = #tpu.pipeline_mode<synchronous>, transform_indices = @transform_3, window_bounds = array<i64: 384, 744>}, {pipeline_mode = #tpu.pipeline_mode<synchronous>, transform_indices = @transform_4, window_bounds = array<i64: 1, 744>}, {transform_indices = @transform_5, window_bounds = array<i64: 8, 744>}]} {
    %c0 = arith.constant 0 : index
    %c0_0 = arith.constant 0 : index
    %0 = vector.load %arg1[%c0, %c0_0] : memref<8x32xf32, #tpu.memory_space<vmem>>, vector<8x32xf32>
    %1 = arith.truncf %0 : vector<8x32xf32> to vector<8x32xbf16>
    %c0_1 = arith.constant 0 : index
    %c0_2 = arith.constant 0 : index
    %2 = vector.load %arg2[%c0_1, %c0_2] : memref<32x384xbf16, #tpu.memory_space<vmem>>, vector<32x384xbf16>
    %cst = arith.constant dense<0.000000e+00> : vector<8x384xf32>
    %3 = tpu.matmul %1, %2, %cst {dimension_numbers = #tpu.dot_dimension_numbers<[1], [0], [0], [1], [0, 0, 1, 1], [], []>} : vector<8x32xbf16>, vector<32x384xbf16>, vector<8x384xf32> -> vector<8x384xf32>
    %c0_3 = arith.constant 0 : index
    %c0_4 = arith.constant 0 : index
    %4 = vector.load %arg3[%c0_3, %c0_4] : memref<1x384xf32, #tpu.memory_space<vmem>>, vector<1x384xf32>
    %5 = vector.broadcast %4 : vector<1x384xf32> to vector<8x384xf32>
    %6 = arith.addf %3, %5 : vector<8x384xf32>
    %cst_5 = arith.constant 0.000000e+00 : f32
    %7 = vector.broadcast %cst_5 : f32 to vector<8x384xf32>
    %8 = arith.cmpf ogt, %6, %7 : vector<8x384xf32>
    %9 = math.exp %6 : vector<8x384xf32>
    %cst_6 = arith.constant 1.000000e+00 : f32
    %10 = vector.broadcast %cst_6 : f32 to vector<8x384xf32>
    %11 = arith.subf %9, %10 : vector<8x384xf32>
    %cst_7 = arith.constant 1.67326319 : f32
    %12 = vector.broadcast %cst_7 : f32 to vector<8x384xf32>
    %13 = arith.mulf %12, %11 : vector<8x384xf32>
    %14 = arith.select %8, %6, %13 : vector<8x384xi1>, vector<8x384xf32>
    %cst_8 = arith.constant 1.05070102 : f32
    %15 = vector.broadcast %cst_8 : f32 to vector<8x384xf32>
    %16 = arith.mulf %15, %14 : vector<8x384xf32>
    %17 = arith.truncf %16 : vector<8x384xf32> to vector<8x384xbf16>
    %c0_9 = arith.constant 0 : index
    %c0_10 = arith.constant 0 : index
    %18 = vector.load %arg4[%c0_9, %c0_10] : memref<384x744xbf16, #tpu.memory_space<vmem>>, vector<384x744xbf16>
    %cst_11 = arith.constant dense<0.000000e+00> : vector<8x744xf32>
    %19 = tpu.matmul %17, %18, %cst_11 {dimension_numbers = #tpu.dot_dimension_numbers<[1], [0], [0], [1], [0, 0, 1, 1], [], []>} : vector<8x384xbf16>, vector<384x744xbf16>, vector<8x744xf32> -> vector<8x744xf32>
    %c0_12 = arith.constant 0 : index
    %c0_13 = arith.constant 0 : index
    %20 = vector.load %arg5[%c0_12, %c0_13] : memref<1x744xf32, #tpu.memory_space<vmem>>, vector<1x744xf32>
    %21 = vector.broadcast %20 : vector<1x744xf32> to vector<8x744xf32>
    %22 = arith.addf %19, %21 : vector<8x744xf32>
    %23 = arith.truncf %22 : vector<8x744xf32> to vector<8x744xbf16>
    %c0_14 = arith.constant 0 : index
    %c0_15 = arith.constant 0 : index
    %24 = vector.load %arg6[%c0_14, %c0_15] : memref<8x744xbf16, #tpu.memory_space<vmem>>, vector<8x744xbf16>
    tpu.vector_store %arg6[%c0_14, %c0_15], %23 {strides = array<i32>} : memref<8x744xbf16, #tpu.memory_space<vmem>>, vector<8x744xbf16>,
    return
  }
  func.func @transform_0(%arg0: i32) -> (i32, i32) {
    %c0_i32 = arith.constant 0 : i32
    %c0_i32_0 = arith.constant 0 : i32
    return %arg0, %c0_i32 : i32, i32
  }
  func.func @transform_1(%arg0: i32) -> (i32, i32) {
    %c0_i32 = arith.constant 0 : i32
    %c0_i32_0 = arith.constant 0 : i32
    %c0_i32_1 = arith.constant 0 : i32
    return %c0_i32, %c0_i32_0 : i32, i32
  }
  func.func @transform_2(%arg0: i32) -> (i32, i32) {
    %c0_i32 = arith.constant 0 : i32
    %c0_i32_0 = arith.constant 0 : i32
    %c0_i32_1 = arith.constant 0 : i32
    return %c0_i32, %c0_i32_0 : i32, i32
  }
  func.func @transform_3(%arg0: i32) -> (i32, i32) {
    %c0_i32 = arith.constant 0 : i32
    %c0_i32_0 = arith.constant 0 : i32
    %c0_i32_1 = arith.constant 0 : i32
    return %c0_i32, %c0_i32_0 : i32, i32
  }
  func.func @transform_4(%arg0: i32) -> (i32, i32) {
    %c0_i32 = arith.constant 0 : i32
    %c0_i32_0 = arith.constant 0 : i32
    %c0_i32_1 = arith.constant 0 : i32
    return %c0_i32, %c0_i32_0 : i32, i32
  }
  func.func @transform_5(%arg0: i32) -> (i32, i32) {
    %c0_i32 = arith.constant 0 : i32
    %c0_i32_0 = arith.constant 0 : i32
    return %arg0, %c0_i32 : i32, i32
  }
}

</mosaic_0001>

<bundles_post_ra>
// kernel: randomnet_forward.1
= control target key start
LH: loop header
LB: loop body
LE: loop exit
PB: predicated region body
PF: predicated region fallthrough
CT: control target
= control target key end

     0   :  { %v1770_v1 = vmov 0   ;;  %vm80_vm0 = vcmask 261120   ;;  %v1771_v11 = vmov 0.0   ;;  %vm1772_vm1 = vmmov 0   ;;  %s2312_s1 = inlined_call_operand.vmem [shape: bf16[32,384], index: 1, kind: input, shape index: {}]   ;;  %s2313_s0 = inlined_call_operand.vmem [shape: f32[8,32], index: 0, kind: input, shape index: {}]   ;;  %s2314_s3 = inlined_call_operand.vmem [shape: bf16[384,744], index: 3, kind: input, shape index: {}]   ;;  %s2315_s2 = inlined_call_operand.vmem [shape: f32[1,384], index: 2, kind: input, shape index: {}]   ;;  %s2316_s4 = inlined_call_operand.vmem [shape: f32[1,744], index: 4, kind: input, shape index: {}]   ;;  %s2317_s5 = inlined_call_operand.vmem [shape: bf16[8,744], index: 5, kind: output, shape index: {}]  }
   0x1   :  { %v1540_v0 = vld [vmem:[%s2312_s1 + $0x1c] ss:$12 sps:$4 sm:$0xff]   ;;  %116 = vmatprep.mubr.bf16.mxu1 %v1770_v1  ;;  %v1542_v2 = vld [vmem:[%s2312_s1 + $0x18] ss:$12 sps:$4 sm:$0xff]   ;;  %v1545_v4 = vld [vmem:[%s2312_s1] ss:$12 sps:$4 sm:$0xff]   ;;  %v33_v60 = vlaneseq }
   0x2   :  { %96 = vmatprep.subr.bf16.mxu1 %v1540_v0  ;;  %v1543_v3 = vld [vmem:[%s2312_s1 + $0x4] ss:$12 sps:$4 sm:$0xff]   ;;  %v1548_v6 = vld [vmem:[%s2314_s3 + $0x154] ss:$24 sps:$4 sm:$0xff]   ;;  %v1553_v12 = vld [vmem:[%s2314_s3 + $0x120] ss:$24 sps:$4 sm:$0xff]  }
   0x3   :  { %97 = vmatpush1.bf16.msra.mxu1 %v1542_v2  ;;  %v21_v5 = vld [vmem:[%s2313_s0] sm:$0xff]  ;;  %v1550_v8 = vld [vmem:[%s2314_s3 + $0x150] ss:$24 sps:$4 sm:$0xff]   ;;  %1085 = vmatprep.subr.bf16.mxu0 %v1548_v6  ;;  %v1554_v13 = vld [vmem:[%s2314_s3 + $0xf4] ss:$24 sps:$4 sm:$0xff]   ;;  %v1978_v61 = vshrl.u32 %v33_v60, 7 }
   0x4   :  { %98 = vmatprep.subr.bf16.mxu1 %v1543_v3  ;;  %v22_v7 = vpack.c.bf16 %v21_v5, %v21_v5  ;;  %v1546_v9 = vld [vmem:[%s2312_s1 + $0x20] ss:$12 sps:$4 sm:$0xff]   ;;  %v1551_v10 = vld [vmem:[%s2314_s3 + $0x124] ss:$24 sps:$4 sm:$0xff]   ;;  %1086 = vmatpush1.bf16.msra.mxu0 %v1550_v8  ;;  %v1547_v14 = vld [vmem:[%s2312_s1 + $0x8] ss:$12 sps:$4 sm:$0xff]  }
   0x5   :  { %1087 = vmatprep.subr.bf16.mxu0 %v1551_v10  ;;  %v1556_v15 = vld [vmem:[%s2314_s3 + $0xf0] ss:$24 sps:$4 sm:$0xff]   ;;  %v1557_v16 = vld [vmem:[%s2314_s3 + $0xc4] ss:$24 sps:$4 sm:$0xff]   ;;  %v1559_v17 = vld [vmem:[%s2314_s3 + $0xc0] ss:$24 sps:$4 sm:$0xff]  }
   0x6   :  { %v1560_v18 = vld [vmem:[%s2314_s3 + $0x94] ss:$24 sps:$4 sm:$0xff]   ;;  %v1562_v19 = vld [vmem:[%s2314_s3 + $0x90] ss:$24 sps:$4 sm:$0xff]   ;;  %v1563_v20 = vld [vmem:[%s2314_s3 + $0x64] ss:$24 sps:$4 sm:$0xff]  }
   0x7   :  { %99 = vmatpush1.bf16.msra.mxu1 %v1545_v4  ;;  %v1565_v21 = vld [vmem:[%s2314_s3 + $0x60] ss:$24 sps:$4 sm:$0xff]   ;;  %v1566_v22 = vld [vmem:[%s2314_s3 + $0x34] ss:$24 sps:$4 sm:$0xff]   ;;  %v1568_v23 = vld [vmem:[%s2314_s3 + $0x30] ss:$24 sps:$4 sm:$0xff]  }
   0x8   :  { %1529 = vmatprep.subr.bf16.mxu1 %v1771_v11  ;;  %1088 = vmatpush1.bf16.msra.mxu0 %v1553_v12  ;;  %v1569_v24 = vld [vmem:[%s2314_s3 + $0x4] ss:$24 sps:$4 sm:$0xff]   ;;  %v1571_v25 = vld [vmem:[%s2314_s3] ss:$24 sps:$4 sm:$0xff]   ;;  %v1572_v26 = vld [vmem:[%s2314_s3 + $0x2d4] ss:$24 sps:$4 sm:$0xff]  }
   0x9   :  { %1089 = vmatprep.subr.bf16.mxu0 %v1554_v13  ;;  %v1574_v27 = vld [vmem:[%s2314_s3 + $0x2d0] ss:$24 sps:$4 sm:$0xff]   ;;  %v1575_v28 = vld [vmem:[%s2314_s3 + $0x2a4] ss:$24 sps:$4 sm:$0xff]   ;;  %v1577_v29 = vld [vmem:[%s2314_s3 + $0x2a0] ss:$24 sps:$4 sm:$0xff]  }
   0xa   :  { %1371 = vmatmul.mubr.msk.bf16.vlgmr.msra.gmra.mxu1 %vm80_vm0, %v22_v7  ;;  %v1580_v30 = vld [vmem:[%s2314_s3 + $0x454] ss:$24 sps:$4 sm:$0xff]   ;;  %v1578_v31 = vld [vmem:[%s2314_s3 + $0x450] ss:$24 sps:$4 sm:$0xff]   ;;  %v1586_v34 = vld [vmem:[%s2314_s3 + $0x424] ss:$24 sps:$4 sm:$0xff]  }
   0xb   :  { %1530 = vmatpush3.bf16.msra.mxu1 %v1546_v9  ;;  %1533 = vmatprep.mubr.msk.bf16.mxu1 %vm1772_vm1, %v1771_v11  ;;  %v1581_v32 = vld [vmem:[%s2314_s3 + $0x274] ss:$24 sps:$4 sm:$0xff]   ;;  %v1583_v33 = vld [vmem:[%s2314_s3 + $0x270] ss:$24 sps:$4 sm:$0xff]   ;;  %v1584_v35 = vld [vmem:[%s2314_s3 + $0x420] ss:$24 sps:$4 sm:$0xff]  }
   0xc   :  { %1531 = vmatprep.subr.bf16.mxu1 %v1771_v11  ;;  %1090 = vmatpush1.bf16.msra.mxu0 %v1556_v15  ;;  %v1587_v36 = vld [vmem:[%s2314_s3 + $0x244] ss:$24 sps:$4 sm:$0xff]   ;;  %v1589_v37 = vld [vmem:[%s2314_s3 + $0x240] ss:$24 sps:$4 sm:$0xff]   ;;  %v1592_v38 = vld [vmem:[%s2314_s3 + $0x3f4] ss:$24 sps:$4 sm:$0xff]  }
   0xd   :  { %1091 = vmatprep.subr.bf16.mxu0 %v1557_v16  ;;  %v1590_v39 = vld [vmem:[%s2314_s3 + $0x3f0] ss:$24 sps:$4 sm:$0xff]   ;;  %v1593_v40 = vld [vmem:[%s2314_s3 + $0x214] ss:$24 sps:$4 sm:$0xff]   ;;  %v1598_v42 = vld [vmem:[%s2314_s3 + $0x3c4] ss:$24 sps:$4 sm:$0xff]  }
   0xe   :  { %v1595_v41 = vld [vmem:[%s2314_s3 + $0x210] ss:$24 sps:$4 sm:$0xff]   ;;  %v1596_v43 = vld [vmem:[%s2314_s3 + $0x3c0] ss:$24 sps:$4 sm:$0xff]   ;;  %v1599_v44 = vld [vmem:[%s2314_s3 + $0x1e4] ss:$24 sps:$4 sm:$0xff]  }
   0xf   :  { %1532 = vmatpush3.bf16.msra.mxu1 %v1547_v14  ;;  %v1601_v45 = vld [vmem:[%s2314_s3 + $0x1e0] ss:$24 sps:$4 sm:$0xff]   ;;  %v1604_v46 = vld [vmem:[%s2314_s3 + $0x394] ss:$24 sps:$4 sm:$0xff]   ;;  %v1602_v47 = vld [vmem:[%s2314_s3 + $0x390] ss:$24 sps:$4 sm:$0xff]  }
  0x10   :  { %1092 = vmatpush1.bf16.msra.mxu0 %v1559_v17  ;;  %1126 = vmatprep.subr.bf16.mxu1 %v1580_v30  ;;  %v1605_v48 = vld [vmem:[%s2314_s3 + $0x1b4] ss:$24 sps:$4 sm:$0xff]   ;;  %v1607_v49 = vld [vmem:[%s2314_s3 + $0x1b0] ss:$24 sps:$4 sm:$0xff]   ;;  %v1610_v50 = vld [vmem:[%s2314_s3 + $0x364] ss:$24 sps:$4 sm:$0xff]  }
  0x11   :  { %1093 = vmatprep.subr.bf16.mxu0 %v1560_v18  ;;  %v1608_v51 = vld [vmem:[%s2314_s3 + $0x360] ss:$24 sps:$4 sm:$0xff]   ;;  %v1611_v52 = vld [vmem:[%s2314_s3 + $0x184] ss:$24 sps:$4 sm:$0xff]   ;;  %v1616_v54 = vld [vmem:[%s2314_s3 + $0x334] ss:$24 sps:$4 sm:$0xff]  }
  0x12   :  { %1534 = vmatmul.mubr.msk.bf16.vlgmr.msra.gmra.mxu1 %vm80_vm0, %v22_v7  ;;  %v1613_v53 = vld [vmem:[%s2314_s3 + $0x180] ss:$24 sps:$4 sm:$0xff]   ;;  %v1614_v55 = vld [vmem:[%s2314_s3 + $0x330] ss:$24 sps:$4 sm:$0xff]   ;;  %v1619_v56 = vld [vmem:[%s2314_s3 + $0x45c] ss:$24 sps:$4 sm:$0xff]  }
  0x13   :  { %1158 = vmatprep.mubr.bf16.mxu1 %v1770_v1  ;;  %1127 = vmatpush1.bf16.msra.mxu1 %v1578_v31  ;;  %v1622_v57 = vld [vmem:[%s2314_s3 + $0x304] ss:$24 sps:$4 sm:$0xff]   ;;  %v1620_v58 = vld [vmem:[%s2314_s3 + $0x300] ss:$24 sps:$4 sm:$0xff]   ;;  %v35_v62 = vsub.s32 0, %v1978_v61  ;;  %v39_v0 = vsub.s32 1, %v1978_v61 }
  0x14   :  { %1094 = vmatpush1.bf16.msra.mxu0 %v1562_v19  ;;  %1128 = vmatprep.subr.bf16.mxu1 %v1586_v34  ;;  %v1628_v59 = vld [vmem:[%s2314_s3 + $0x15c] ss:$24 sps:$4 sm:$0xff]   ;;  %v31_v63 = vld [vmem:[%s2315_s2] sm:$0x7]  ;;  %v43_v6 = vsub.s32 2, %v1978_v61  ;;  %vm1357_vm5 = vcmask 1043456  }
  0x15   :  { %1095 = vmatprep.subr.bf16.mxu0 %v1563_v20  ;;  %v36_v2 = vrot.slane %v31_v63, %v35_v62  ;;  %v40_v3 = vrot.slane %v31_v63, %v39_v0  ;;  %v1653_v60 = vld [vmem:[%s2314_s3 + $0x338] ss:$24 sps:$4 sm:$0xff]   ;;  %vm1358_vm6 = vcmask 850948  }
  0x16   :  { %v44_v12 = vrot.slane %v31_v63, %v43_v6  ;;  %v1656_v63 = vld [vmem:[%s2314_s3 + $0x68] ss:$24 sps:$4 sm:$0xff]   ;;  %vm1359_vm7 = vmor %vm1358_vm6, %vm1357_vm5 }
  0x17   :  { %1129 = vmatpush1.bf16.msra.mxu1 %v1584_v35 }
  0x18   :  { %1096 = vmatpush1.bf16.msra.mxu0 %v1565_v21  ;;  %1130 = vmatprep.subr.bf16.mxu1 %v1592_v38 }
  0x19   :  { %1097 = vmatprep.subr.bf16.mxu0 %v1566_v22 }
  0x1b   :  { %1131 = vmatpush1.bf16.msra.mxu1 %v1590_v39  ;;  %v1623_v39 = vld [vmem:[%s2314_s3 + $0x428] ss:$24 sps:$4 sm:$0xff]  }
  0x1c   :  { %1098 = vmatpush1.bf16.msra.mxu0 %v1568_v23  ;;  %1132 = vmatprep.subr.bf16.mxu1 %v1598_v42  ;;  %v1631_v42 = vld [vmem:[%s2314_s3 + $0x3fc] ss:$24 sps:$4 sm:$0xff]  }
  0x1d   :  { %1099 = vmatprep.subr.bf16.mxu0 %v1569_v24 }
  0x1f   :  { %1133 = vmatpush1.bf16.msra.mxu1 %v1596_v43  ;;  %v1634_v43 = vld [vmem:[%s2314_s3 + $0x12c] ss:$24 sps:$4 sm:$0xff]  }
  0x20   :  { %1100 = vmatpush1.bf16.msra.mxu0 %v1571_v25  ;;  %1134 = vmatprep.subr.bf16.mxu1 %v1604_v46  ;;  %v1637_v46 = vld [vmem:[%s2314_s3 + $0x3cc] ss:$24 sps:$4 sm:$0xff]  }
  0x21   :  { %1101 = vmatprep.subr.bf16.mxu0 %v1572_v26 }
  0x23   :  { %1135 = vmatpush1.bf16.msra.mxu1 %v1602_v47  ;;  %v1640_v47 = vld [vmem:[%s2314_s3 + $0xfc] ss:$24 sps:$4 sm:$0xff]  }
  0x24   :  { %1102 = vmatpush2.bf16.msra.mxu0 %v1574_v27  ;;  %1136 = vmatprep.subr.bf16.mxu1 %v1610_v50  ;;  %v1643_v50 = vld [vmem:[%s2314_s3 + $0x39c] ss:$24 sps:$4 sm:$0xff]  }
  0x25   :  { %1103 = vmatprep.subr.bf16.mxu0 %v1575_v28 }
  0x27   :  { %1137 = vmatpush1.bf16.msra.mxu1 %v1608_v51  ;;  %v1646_v51 = vld [vmem:[%s2314_s3 + $0xcc] ss:$24 sps:$4 sm:$0xff]  }
  0x28   :  { %1104 = vmatpush2.bf16.msra.mxu0 %v1577_v29  ;;  %1138 = vmatprep.subr.bf16.mxu1 %v1616_v54  ;;  %v1649_v54 = vld [vmem:[%s2314_s3 + $0x36c] ss:$24 sps:$4 sm:$0xff]  }
  0x29   :  { %1105 = vmatprep.subr.bf16.mxu0 %v1581_v32 }
  0x2b   :  { %1139 = vmatpush1.bf16.msra.mxu1 %v1614_v55  ;;  %v1652_v55 = vld [vmem:[%s2314_s3 + $0x9c] ss:$24 sps:$4 sm:$0xff]  }
  0x2c   :  { %1106 = vmatpush2.bf16.msra.mxu0 %v1583_v33  ;;  %1140 = vmatprep.subr.bf16.mxu1 %v1622_v57  ;;  %v1617_v33 = vld [vmem:[%s2314_s3 + $0x458] ss:$24 sps:$4 sm:$0xff]  }
  0x2d   :  { %1107 = vmatprep.subr.bf16.mxu0 %v1587_v36  ;;  %v1625_v36 = vld [vmem:[%s2314_s3 + $0x42c] ss:$24 sps:$4 sm:$0xff]   ;;  %v1650_v57 = vld [vmem:[%s2314_s3 + $0x98] ss:$24 sps:$4 sm:$0xff]  }
  0x2f   :  { %1141 = vmatpush1.bf16.msra.mxu1 %v1620_v58  ;;  %v1655_v58 = vld [vmem:[%s2314_s3 + $0x33c] ss:$24 sps:$4 sm:$0xff]  }
  0x30   :  { %1108 = vmatpush2.bf16.msra.mxu0 %v1589_v37  ;;  %1167 = vmatprep.subr.bf16.mxu1 %v1628_v59  ;;  %v1658_v59 = vld [vmem:[%s2314_s3 + $0x6c] ss:$24 sps:$4 sm:$0xff]  }
  0x31   :  { %1109 = vmatprep.subr.bf16.mxu0 %v1593_v40  ;;  %v1626_v40 = vld [vmem:[%s2314_s3 + $0x158] ss:$24 sps:$4 sm:$0xff]  }
  0x34   :  { %1110 = vmatpush2.bf16.msra.mxu0 %v1595_v41 }
  0x35   :  { %1111 = vmatprep.subr.bf16.mxu0 %v1599_v44  ;;  %v1629_v44 = vld [vmem:[%s2314_s3 + $0x3f8] ss:$24 sps:$4 sm:$0xff]  }
  0x38   :  { %1112 = vmatpush2.bf16.msra.mxu0 %v1601_v45  ;;  %v1632_v45 = vld [vmem:[%s2314_s3 + $0x128] ss:$24 sps:$4 sm:$0xff]  }
  0x39   :  { %1113 = vmatprep.subr.bf16.mxu0 %v1605_v48  ;;  %v1635_v48 = vld [vmem:[%s2314_s3 + $0x3c8] ss:$24 sps:$4 sm:$0xff]  }
  0x3c   :  { %1114 = vmatpush2.bf16.msra.mxu0 %v1607_v49  ;;  %v1638_v49 = vld [vmem:[%s2314_s3 + $0xf8] ss:$24 sps:$4 sm:$0xff]  }
  0x3d   :  { %1115 = vmatprep.subr.bf16.mxu0 %v1611_v52  ;;  %v1641_v52 = vld [vmem:[%s2314_s3 + $0x398] ss:$24 sps:$4 sm:$0xff]  }
  0x40   :  { %1116 = vmatpush2.bf16.msra.mxu0 %v1613_v53  ;;  %v1644_v53 = vld [vmem:[%s2314_s3 + $0xc8] ss:$24 sps:$4 sm:$0xff]  }
  0x41   :  { %1208 = vmatprep.subr.bf16.mxu0 %v1619_v56  ;;  %v1647_v56 = vld [vmem:[%s2314_s3 + $0x368] ss:$24 sps:$4 sm:$0xff]  }
  0xca   :  { %v118_v4 = vpop.f32.mrf.mxu1 }
  0xcb   :  { %v119_v5 = vadd.f32 %v118_v4, %v36_v2  ;;  %v1661_v2 = vld [vmem:[%s2314_s3 + $0x30c] ss:$24 sps:$4 sm:$0xff]   ;;  %v1659_v4 = vld [vmem:[%s2314_s3 + $0x308] ss:$24 sps:$4 sm:$0xff]  }
  0xcc   :  { %v120_v7 = vpop.f32.mrf.mxu1 }
  0xcd   :  { %v168_v8 = vmul.f32 1.442695, %v119_v5  ;;  %v121_v9 = vadd.f32 %v120_v7, %v40_v3  ;;  %vm165_vm2 = vcmp.gt.f32.partialorder %v119_v5, 0.0  ;;  %v1664_v3 = vld [vmem:[%s2314_s3 + $0x3c] ss:$24 sps:$4 sm:$0xff]  }
  0xce   :  { %v122_v10 = vpop.f32.mrf.mxu1  ;;  %v1667_v7 = vld [vmem:[%s2314_s3 + $0x164] ss:$24 sps:$4 sm:$0xff]  }
  0xcf   :  { %1764 = vpow2.f32 %v168_v8  ;;  %v170_v11 = vmul.f32 1.442695, %v121_v9  ;;  %vm166_vm3 = vcmp.gt.f32.partialorder %v121_v9, 0.0  ;;  %v1670_v8 = vld [vmem:[%s2314_s3 + $0xc] ss:$24 sps:$4 sm:$0xff]  }
  0xd0   :  { %v123_v13 = vpop.f32.mrf.mxu1  ;;  %v1668_v10 = vld [vmem:[%s2314_s3 + $0x8] ss:$24 sps:$4 sm:$0xff]  }
  0xd1   :  { %1766 = vpow2.f32 %v170_v11  ;;  %v1673_v11 = vld [vmem:[%s2314_s3 + $0x134] ss:$24 sps:$4 sm:$0xff]   ;;  %v1671_v13 = vld [vmem:[%s2314_s3 + $0x130] ss:$24 sps:$4 sm:$0xff]  }
  0xd2   :  { %v159_v14 = vpop.f32.mrf.mxu1 }
  0xd3   :  { %v160_v15 = vadd.f32 %v159_v14, %v44_v12  ;;  %v1676_v12 = vld [vmem:[%s2314_s3 + $0x2dc] ss:$24 sps:$4 sm:$0xff]   ;;  %v1674_v14 = vld [vmem:[%s2314_s3 + $0x2d8] ss:$24 sps:$4 sm:$0xff]  }
  0xd4   :  { %v1535_v16 = vpop.f32.mrf.mxu1 }
  0xd5   :  { %v172_v17 = vmul.f32 1.442695, %v160_v15  ;;  %vm167_vm4 = vcmp.gt.f32.partialorder %v160_v15, 0.0  ;;  %v1682_v16 = vld [vmem:[%s2314_s3 + $0x2ac] ss:$24 sps:$4 sm:$0xff]  }
  0xd6   :  { %v162_v18 = vpop.f32.mrf.mxu1 }
  0xd7   :  { %1768 = vpow2.f32 %v172_v17  ;;  %v1677_v17 = vld [vmem:[%s2314_s3 + $0x100] ss:$24 sps:$4 sm:$0xff]  }
  0xd8   :  { %v1536_v19 = vpop.f32.mrf.mxu1  ;;  %v1680_v18 = vld [vmem:[%s2314_s3 + $0x2a8] ss:$24 sps:$4 sm:$0xff]  }
  0xd9   :  { %v1685_v19 = vld [vmem:[%s2314_s3 + $0xd4] ss:$24 sps:$4 sm:$0xff]  }
  0xdc   :  { %v1765_v20 = vpop.eup %1764 }
  0xdd   :  { %v1373_v21 = vadd.f32 -1.0, %v1765_v20  ;;  %v1688_v20 = vld [vmem:[%s2314_s3 + $0x27c] ss:$24 sps:$4 sm:$0xff]  }
  0xde   :  { %v1767_v22 = vpop.eup %1766 }
  0xdf   :  { %v1374_v23 = vadd.f32 -1.0, %v1767_v22  ;;  %v177_v24 = vmul.f32 1.6732632, %v1373_v21  ;;  %v1683_v21 = vld [vmem:[%s2314_s3 + $0xd0] ss:$24 sps:$4 sm:$0xff]  }
  0xe0   :  { %v1686_v22 = vld [vmem:[%s2314_s3 + $0x278] ss:$24 sps:$4 sm:$0xff]  }
  0xe1   :  { %v178_v25 = vmul.f32 1.6732632, %v1374_v23  ;;  %v180_v26 = vsel %vm165_vm2, %v119_v5, %v177_v24  ;;  %v1662_v5 = vld [vmem:[%s2314_s3 + $0x38] ss:$24 sps:$4 sm:$0xff]   ;;  %v1691_v23 = vld [vmem:[%s2314_s3 + $0xa4] ss:$24 sps:$4 sm:$0xff]  }
  0xe2   :  { %v183_v28 = vmul.f32 1.050701, %v180_v26  ;;  %v1694_v24 = vld [vmem:[%s2314_s3 + $0x24c] ss:$24 sps:$4 sm:$0xff]   ;;  %v1692_v26 = vld [vmem:[%s2314_s3 + $0x248] ss:$24 sps:$4 sm:$0xff]  }
  0xe3   :  { %v181_v27 = vsel %vm166_vm3, %v121_v9, %v178_v25  ;;  %v1665_v9 = vld [vmem:[%s2314_s3 + $0x160] ss:$24 sps:$4 sm:$0xff]  }
  0xe4   :  { %v1769_v29 = vpop.eup %1768  ;;  %v184_v30 = vmul.f32 1.050701, %v181_v27  ;;  %v1997_v35 = vpack.c.bf16 %v183_v28, %v183_v28  ;;  %v1689_v25 = vld [vmem:[%s2314_s3 + $0xa0] ss:$24 sps:$4 sm:$0xff]   ;;  %v1697_v27 = vld [vmem:[%s2314_s3 + $0x74] ss:$24 sps:$4 sm:$0xff]  }
  0xe5   :  { %v1375_v31 = vadd.f32 -1.0, %v1769_v29  ;;  %v1700_v28 = vld [vmem:[%s2314_s3 + $0x21c] ss:$24 sps:$4 sm:$0xff]   ;;  %v1695_v29 = vld [vmem:[%s2314_s3 + $0x70] ss:$24 sps:$4 sm:$0xff]  }
  0xe6   :  { %v1992_v32 = vpack.c.bf16 %v184_v30, %v184_v30  ;;  %v1698_v30 = vld [vmem:[%s2314_s3 + $0x218] ss:$24 sps:$4 sm:$0xff]  }
  0xe7   :  { %v179_v34 = vmul.f32 1.6732632, %v1375_v31  ;;  %v1703_v31 = vld [vmem:[%s2314_s3 + $0x44] ss:$24 sps:$4 sm:$0xff]  }
  0xe8   :  { %1117 = vmatprep.mubr.bf16.mxu0 %v1992_v32 }
  0xe9   :  { %v182_v37 = vsel %vm167_vm4, %v160_v15, %v179_v34  ;;  %1118 = vmatmul.mubr.bf16.vlgmr.msra.gmra.mxu0 %v1997_v35  ;;  %v1679_v15 = vld [vmem:[%s2314_s3 + $0x104] ss:$24 sps:$4 sm:$0xff]   ;;  %v1704_v34 = vld [vmem:[%s2314_s3 + $0x1e8] ss:$24 sps:$4 sm:$0xff]  }
  0xea   :  { %v185_v38 = vmul.f32 1.050701, %v182_v37  ;;  %1209 = vmatpush1.bf16.msra.mxu0 %v1617_v33  ;;  %1240 = vmatprep.mubr.bf16.mxu0 %v1770_v1  ;;  %v1701_v33 = vld [vmem:[%s2314_s3 + $0x40] ss:$24 sps:$4 sm:$0xff]   ;;  %v1712_v37 = vld [vmem:[%s2314_s3 + $0x1bc] ss:$24 sps:$4 sm:$0xff]  }
  0xeb   :  { %1210 = vmatprep.subr.bf16.mxu0 %v1625_v36  ;;  %v1709_v36 = vld [vmem:[%s2314_s3 + $0x14] ss:$24 sps:$4 sm:$0xff]  }
  0xec   :  { %v2011_v41 = vpack.c.bf16 %v185_v38, %v185_v38  ;;  %v1707_v38 = vld [vmem:[%s2314_s3 + $0x10] ss:$24 sps:$4 sm:$0xff]  }
  0xee   :  { %1211 = vmatpush1.bf16.msra.mxu0 %v1623_v39  ;;  %1159 = vmatmul.mubr.bf16.vlgmr.msra.gmra.mxu1 %v2011_v41  ;;  %v1710_v39 = vld [vmem:[%s2314_s3 + $0x1b8] ss:$24 sps:$4 sm:$0xff]  }
  0xef   :  { %1168 = vmatpush1.bf16.msra.mxu1 %v1626_v40  ;;  %1199 = vmatprep.mubr.bf16.mxu1 %v1992_v32  ;;  %v1715_v40 = vld [vmem:[%s2314_s3 + $0x2e4] ss:$24 sps:$4 sm:$0xff]  }
  0xf0   :  { %1212 = vmatprep.subr.bf16.mxu0 %v1631_v42  ;;  %1169 = vmatprep.subr.bf16.mxu1 %v1634_v43  ;;  %v1718_v42 = vld [vmem:[%s2314_s3 + $0x18c] ss:$24 sps:$4 sm:$0xff]   ;;  %v1713_v43 = vld [vmem:[%s2314_s3 + $0x2e0] ss:$24 sps:$4 sm:$0xff]  }
  0xf2   :  { %1213 = vmatpush1.bf16.msra.mxu0 %v1629_v44  ;;  %v1716_v44 = vld [vmem:[%s2314_s3 + $0x188] ss:$24 sps:$4 sm:$0xff]  }
  0xf3   :  { %1170 = vmatpush1.bf16.msra.mxu1 %v1632_v45  ;;  %1214 = vmatprep.subr.bf16.mxu0 %v1637_v46  ;;  %v1721_v45 = vld [vmem:[%s2314_s3 + $0x2b4] ss:$24 sps:$4 sm:$0xff]   ;;  %v1724_v46 = vld [vmem:[%s2314_s3 + $0x464] ss:$24 sps:$4 sm:$0xff]  }
  0xf4   :  { %1171 = vmatprep.subr.bf16.mxu1 %v1640_v47  ;;  %v1719_v47 = vld [vmem:[%s2314_s3 + $0x2b0] ss:$24 sps:$4 sm:$0xff]  }
  0xf6   :  { %1215 = vmatpush1.bf16.msra.mxu0 %v1635_v48  ;;  %v1722_v48 = vld [vmem:[%s2314_s3 + $0x460] ss:$24 sps:$4 sm:$0xff]  }
  0xf7   :  { %1172 = vmatpush1.bf16.msra.mxu1 %v1638_v49  ;;  %1216 = vmatprep.subr.bf16.mxu0 %v1643_v50  ;;  %v1727_v49 = vld [vmem:[%s2314_s3 + $0x284] ss:$24 sps:$4 sm:$0xff]   ;;  %v1730_v50 = vld [vmem:[%s2314_s3 + $0x434] ss:$24 sps:$4 sm:$0xff]  }
  0xf8   :  { %1173 = vmatprep.subr.bf16.mxu1 %v1646_v51  ;;  %v1725_v51 = vld [vmem:[%s2314_s3 + $0x280] ss:$24 sps:$4 sm:$0xff]  }
  0xfa   :  { %1217 = vmatpush1.bf16.msra.mxu0 %v1641_v52  ;;  %v1728_v52 = vld [vmem:[%s2314_s3 + $0x430] ss:$24 sps:$4 sm:$0xff]  }
  0xfb   :  { %1174 = vmatpush1.bf16.msra.mxu1 %v1644_v53  ;;  %1218 = vmatprep.subr.bf16.mxu0 %v1649_v54  ;;  %v1733_v53 = vld [vmem:[%s2314_s3 + $0x254] ss:$24 sps:$4 sm:$0xff]   ;;  %v1736_v54 = vld [vmem:[%s2314_s3 + $0x404] ss:$24 sps:$4 sm:$0xff]  }
  0xfc   :  { %1175 = vmatprep.subr.bf16.mxu1 %v1652_v55  ;;  %v1731_v55 = vld [vmem:[%s2314_s3 + $0x250] ss:$24 sps:$4 sm:$0xff]  }
  0xfe   :  { %1219 = vmatpush1.bf16.msra.mxu0 %v1647_v56  ;;  %v1734_v56 = vld [vmem:[%s2314_s3 + $0x400] ss:$24 sps:$4 sm:$0xff]  }
  0xff   :  { %1176 = vmatpush1.bf16.msra.mxu1 %v1650_v57  ;;  %1220 = vmatprep.subr.bf16.mxu0 %v1655_v58  ;;  %v1739_v57 = vld [vmem:[%s2314_s3 + $0x224] ss:$24 sps:$4 sm:$0xff]   ;;  %v1737_v58 = vld [vmem:[%s2314_s3 + $0x220] ss:$24 sps:$4 sm:$0xff]  }
 0x100   :  { %1177 = vmatprep.subr.bf16.mxu1 %v1658_v59  ;;  %v1740_v59 = vld [vmem:[%s2314_s3 + $0x3d0] ss:$24 sps:$4 sm:$0xff]  }
 0x102   :  { %1221 = vmatpush1.bf16.msra.mxu0 %v1653_v60  ;;  %v1745_v60 = vld [vmem:[%s2314_s3 + $0x1f4] ss:$24 sps:$4 sm:$0xff]  }
 0x103   :  { %1178 = vmatpush1.bf16.msra.mxu1 %v1656_v63  ;;  %1222 = vmatprep.subr.bf16.mxu0 %v1661_v2  ;;  %v1748_v63 = vld [vmem:[%s2314_s3 + $0x3a4] ss:$24 sps:$4 sm:$0xff]   ;;  %v1743_v2 = vld [vmem:[%s2314_s3 + $0x1f0] ss:$24 sps:$4 sm:$0xff]  }
 0x104   :  { %1179 = vmatprep.subr.bf16.mxu1 %v1664_v3  ;;  %v1746_v3 = vld [vmem:[%s2314_s3 + $0x3a0] ss:$24 sps:$4 sm:$0xff]  }
 0x106   :  { %1223 = vmatpush1.bf16.msra.mxu0 %v1659_v4  ;;  %v1751_v4 = vld [vmem:[%s2314_s3 + $0x1c4] ss:$24 sps:$4 sm:$0xff]  }
 0x107   :  { %1180 = vmatpush1.bf16.msra.mxu1 %v1662_v5  ;;  %1249 = vmatprep.subr.bf16.mxu0 %v1667_v7  ;;  %v1754_v5 = vld [vmem:[%s2314_s3 + $0x374] ss:$24 sps:$4 sm:$0xff]   ;;  %v1749_v7 = vld [vmem:[%s2314_s3 + $0x1c0] ss:$24 sps:$4 sm:$0xff]  }
 0x108   :  { %1181 = vmatprep.subr.bf16.mxu1 %v1670_v8  ;;  %v1752_v8 = vld [vmem:[%s2314_s3 + $0x370] ss:$24 sps:$4 sm:$0xff]  }
 0x109   :  { %1241 = vmatmul.mubr.bf16.vlgmr.msra.gmra.mxu0 %v2011_v41 }
 0x10a   :  { %1250 = vmatpush1.bf16.msra.mxu0 %v1665_v9  ;;  %1281 = vmatprep.mubr.bf16.mxu0 %v1992_v32  ;;  %v1706_v32 = vld [vmem:[%s2314_s3 + $0x1ec] ss:$24 sps:$4 sm:$0xff]  }
 0x10b   :  { %1182 = vmatpush1.bf16.msra.mxu1 %v1668_v10  ;;  %1251 = vmatprep.subr.bf16.mxu0 %v1673_v11  ;;  %v1757_v9 = vld [vmem:[%s2314_s3 + $0x194] ss:$24 sps:$4 sm:$0xff]   ;;  %v1760_v10 = vld [vmem:[%s2314_s3 + $0x344] ss:$24 sps:$4 sm:$0xff]   ;;  %v1755_v11 = vld [vmem:[%s2314_s3 + $0x190] ss:$24 sps:$4 sm:$0xff]  }
 0x10c   :  { %1183 = vmatprep.subr.bf16.mxu1 %v1676_v12  ;;  %v1758_v12 = vld [vmem:[%s2314_s3 + $0x340] ss:$24 sps:$4 sm:$0xff]  }
 0x10e   :  { %1252 = vmatpush1.bf16.msra.mxu0 %v1671_v13  ;;  %v1763_v13 = vld [vmem:[%s2314_s3 + $0x314] ss:$24 sps:$4 sm:$0xff]  }
 0x10f   :  { %1184 = vmatpush2.bf16.msra.mxu1 %v1674_v14  ;;  %1253 = vmatprep.subr.bf16.mxu0 %v1679_v15  ;;  %v1761_v14 = vld [vmem:[%s2314_s3 + $0x310] ss:$24 sps:$4 sm:$0xff]   ;;  %v333_v15 = vld [vmem:[%s2316_s4] sm:$0x3f] }
 0x110   :  { %1185 = vmatprep.subr.bf16.mxu1 %v1682_v16 }
 0x112   :  { %1254 = vmatpush1.bf16.msra.mxu0 %v1677_v17  ;;  %v338_v17 = vrot.slane %v333_v15, %v35_v62 }
 0x113   :  { %1186 = vmatpush2.bf16.msra.mxu1 %v1680_v18  ;;  %1255 = vmatprep.subr.bf16.mxu0 %v1685_v19  ;;  %v342_v18 = vrot.slane %v333_v15, %v39_v0 }
 0x114   :  { %1187 = vmatprep.subr.bf16.mxu1 %v1688_v20 }
 0x116   :  { %1256 = vmatpush1.bf16.msra.mxu0 %v1683_v21 }
 0x117   :  { %1188 = vmatpush2.bf16.msra.mxu1 %v1686_v22  ;;  %1257 = vmatprep.subr.bf16.mxu0 %v1691_v23 }
 0x118   :  { %1189 = vmatprep.subr.bf16.mxu1 %v1694_v24 }
 0x11a   :  { %1258 = vmatpush1.bf16.msra.mxu0 %v1689_v25 }
 0x11b   :  { %1190 = vmatpush2.bf16.msra.mxu1 %v1692_v26  ;;  %1259 = vmatprep.subr.bf16.mxu0 %v1697_v27 }
 0x11c   :  { %1191 = vmatprep.subr.bf16.mxu1 %v1700_v28 }
 0x11e   :  { %1260 = vmatpush1.bf16.msra.mxu0 %v1695_v29 }
 0x11f   :  { %1192 = vmatpush2.bf16.msra.mxu1 %v1698_v30  ;;  %1261 = vmatprep.subr.bf16.mxu0 %v1703_v31  ;;  %v349_v31 = vsub.s32 3, %v1978_v61 }
 0x120   :  { %1193 = vmatprep.subr.bf16.mxu1 %v1706_v32  ;;  %v346_v32 = vrot.slane %v333_v15, %v43_v6 }
 0x122   :  { %1262 = vmatpush1.bf16.msra.mxu0 %v1701_v33  ;;  %v350_v33 = vrot.slane %v333_v15, %v349_v31 }
 0x123   :  { %1194 = vmatpush2.bf16.msra.mxu1 %v1704_v34  ;;  %1263 = vmatprep.subr.bf16.mxu0 %v1709_v36 }
 0x124   :  { %1195 = vmatprep.subr.bf16.mxu1 %v1712_v37 }
 0x126   :  { %1264 = vmatpush1.bf16.msra.mxu0 %v1707_v38 }
 0x127   :  { %1196 = vmatpush2.bf16.msra.mxu1 %v1710_v39  ;;  %1265 = vmatprep.subr.bf16.mxu0 %v1715_v40 }
 0x128   :  { %1197 = vmatprep.subr.bf16.mxu1 %v1718_v42 }
 0x12a   :  { %1266 = vmatpush2.bf16.msra.mxu0 %v1713_v43 }
 0x12b   :  { %1198 = vmatpush2.bf16.msra.mxu1 %v1716_v44  ;;  %1267 = vmatprep.subr.bf16.mxu0 %v1721_v45  ;;  %v353_v45 = vsub.s32 4, %v1978_v61 }
 0x12c   :  { %1290 = vmatprep.subr.bf16.mxu1 %v1724_v46  ;;  %v357_v46 = vsub.s32 5, %v1978_v61 }
 0x12d   :  { %v354_v6 = vrot.slane %v333_v15, %v353_v45 }
 0x12e   :  { %1200 = vmatmul.mubr.bf16.vlgmr.msra.gmra.mxu1 %v1997_v35  ;;  %1268 = vmatpush2.bf16.msra.mxu0 %v1719_v47 }
 0x12f   :  { %1291 = vmatpush1.bf16.msra.mxu1 %v1722_v48  ;;  %1269 = vmatprep.subr.bf16.mxu0 %v1727_v49  ;;  %v358_v48 = vrot.slane %v333_v15, %v357_v46 }
 0x130   :  { %1292 = vmatprep.subr.bf16.mxu1 %v1730_v50  ;;  %1322 = vmatprep.mubr.bf16.mxu1 %v1770_v1  ;;  %v1742_v1 = vld [vmem:[%s2314_s3 + $0x3d4] ss:$24 sps:$4 sm:$0xff]  }
 0x132   :  { %1270 = vmatpush2.bf16.msra.mxu0 %v1725_v51 }
 0x133   :  { %1293 = vmatpush1.bf16.msra.mxu1 %v1728_v52  ;;  %1271 = vmatprep.subr.bf16.mxu0 %v1733_v53 }
 0x134   :  { %1294 = vmatprep.subr.bf16.mxu1 %v1736_v54 }
 0x136   :  { %1272 = vmatpush2.bf16.msra.mxu0 %v1731_v55 }
 0x137   :  { %1295 = vmatpush1.bf16.msra.mxu1 %v1734_v56  ;;  %1273 = vmatprep.subr.bf16.mxu0 %v1739_v57 }
 0x138   :  { %1296 = vmatprep.subr.bf16.mxu1 %v1742_v1 }
 0x13a   :  { %1274 = vmatpush2.bf16.msra.mxu0 %v1737_v58 }
 0x13b   :  { %1297 = vmatpush1.bf16.msra.mxu1 %v1740_v59  ;;  %1275 = vmatprep.subr.bf16.mxu0 %v1745_v60 }
 0x13c   :  { %1298 = vmatprep.subr.bf16.mxu1 %v1748_v63 }
 0x13e   :  { %1276 = vmatpush2.bf16.msra.mxu0 %v1743_v2 }
 0x13f   :  { %1299 = vmatpush1.bf16.msra.mxu1 %v1746_v3  ;;  %1277 = vmatprep.subr.bf16.mxu0 %v1751_v4 }
 0x140   :  { %1300 = vmatprep.subr.bf16.mxu1 %v1754_v5 }
 0x142   :  { %1278 = vmatpush2.bf16.msra.mxu0 %v1749_v7 }
 0x143   :  { %1301 = vmatpush1.bf16.msra.mxu1 %v1752_v8  ;;  %1279 = vmatprep.subr.bf16.mxu0 %v1757_v9 }
 0x144   :  { %1302 = vmatprep.subr.bf16.mxu1 %v1760_v10 }
 0x146   :  { %1280 = vmatpush2.bf16.msra.mxu0 %v1755_v11 }
 0x147   :  { %1303 = vmatpush1.bf16.msra.mxu1 %v1758_v12 }
 0x148   :  { %1304 = vmatprep.subr.bf16.mxu1 %v1763_v13 }
 0x149   :  { %1282 = vmatmul.mubr.bf16.vlgmr.msra.gmra.mxu0 %v1997_v35 }
 0x14b   :  { %1305 = vmatpush1.bf16.msra.mxu1 %v1761_v14 }
 0x14e   :  { %1323 = vmatmul.mubr.bf16.vlgmr.msra.gmra.mxu1 %v2011_v41 }
 0x1a9   :  { %v1119_v16 = vpop.f32.mrf.mxu0 }
 0x1aa   :  { %v1120_v22 = vadd.f32 %v1119_v16, %v338_v17 }
 0x1ab   :  { %v1121_v19 = vpop.f32.mrf.mxu0 }
 0x1ac   :  { %v1122_v23 = vadd.f32 %v1121_v19, %v342_v18 }
 0x1ad   :  { %v1123_v20 = vpop.f32.mrf.mxu0 }
 0x1ae   :  { %v1160_v21 = vpop.f32.mrf.mxu1 }
 0x1af   :  { %v1124_v35 = vpop.f32.mrf.mxu0  ;;  %v1161_v25 = vadd.f32 %v1160_v21, %v1120_v22 }
 0x1b0   :  { %v1162_v24 = vpop.f32.mrf.mxu1 }
 0x1b1   :  { %v1163_v41 = vadd.f32 %v1162_v24, %v1122_v23 }
 0x1b2   :  { %v1164_v26 = vpop.f32.mrf.mxu1 }
 0x1b3   :  { %v1523_v27 = vpack.c.bf16 %v1163_v41, %v1161_v25 }
 0x1b4   :  { %v1165_v28 = vpop.f32.mrf.mxu1 }
 0x1b5   :  { %1355 = vst [vmem:[%s2317_s5] sm:$0xff] %v1523_v27 }
 0x1c9   :  { %v1242_v62 = vpop.f32.mrf.mxu0 }
 0x1cb   :  { %v1244_v29 = vpop.f32.mrf.mxu0 }
 0x1cd   :  { %v1246_v30 = vpop.f32.mrf.mxu0 }
 0x1cf   :  { %v1247_v0 = vpop.f32.mrf.mxu0 }
 0x1ee   :  { %v1201_v34 = vpop.f32.mrf.mxu1 }
 0x1ef   :  { %v1202_v36 = vadd.f32 %v1201_v34, %v346_v32 }
 0x1f0   :  { %v1203_v37 = vpop.f32.mrf.mxu1 }
 0x1f1   :  { %v1204_v38 = vadd.f32 %v1203_v37, %v350_v33  ;;  %v1243_v40 = vadd.f32 %v1242_v62, %v1202_v36 }
 0x1f2   :  { %v1205_v39 = vpop.f32.mrf.mxu1 }
 0x1f3   :  { %v1245_v42 = vadd.f32 %v1244_v29, %v1204_v38 }
 0x1f4   :  { %v1206_v43 = vpop.f32.mrf.mxu1 }
 0x1f5   :  { %v1524_v44 = vpack.c.bf16 %v1245_v42, %v1243_v40 }
 0x1f7   :  { %1356 = vst [vmem:[%s2317_s5 + $0x8] sm:$0xff] %v1524_v44 }
 0x209   :  { %v1283_v47 = vpop.f32.mrf.mxu0 }
 0x20a   :  { %v1284_v52 = vadd.f32 %v1283_v47, %v354_v6 }
 0x20b   :  { %v1285_v49 = vpop.f32.mrf.mxu0 }
 0x20c   :  { %v1286_v53 = vadd.f32 %v1285_v49, %v358_v48 }
 0x20d   :  { %v1287_v50 = vpop.f32.mrf.mxu0 }
 0x20e   :  { %v1324_v51 = vpop.f32.mrf.mxu1 }
 0x20f   :  { %v1288_v54 = vpop.f32.mrf.mxu0  ;;  %v1325_v56 = vadd.f32 %v1324_v51, %v1284_v52 }
 0x210   :  { %v1326_v55 = vpop.f32.mrf.mxu1 }
 0x211   :  { %v1327_v57 = vadd.f32 %v1326_v55, %v1286_v53 }
 0x212   :  { %v1328_v1 = vpop.f32.mrf.mxu1 }
 0x213   :  { %v1525_v58 = vpack.c.bf16 %v1327_v57, %v1325_v56 }
 0x214   :  { %v1329_v59 = vpop.f32.mrf.mxu1 }
 0x215   :  { %1360 = vst.msk [vmem:[%s2317_s5 + $0x10] sm:$0xff] %vm1359_vm7, %v1525_v58 }

</bundles_post_ra>
